<compile_context>
chip_gen: v7x
topology: tpu7x:2x2x1
jax: 0.10.0
libtpu: 0.0.40
codegen_flags: <defaults>
</compile_context>

<pallas_src>
import functools

import jax
import jax.numpy as jnp
from jax.experimental import pallas as pl
from jax.experimental.pallas import tpu as pltpu


_LANE = 128   # TPU lane width (last-dim alignment)

# Opt-in: single-buffer the constant-index_map weight blocks with
# pipeline_mode=pl.Buffered(1).  The constant index_map already prevents
# re-DMA each grid step, so this only saves a few hundred KiB of VMEM and is
# build-dependent; kept off by default for portability (no silent fallback).
_SINGLE_BUFFER_WEIGHTS = False


def _round_up(n, m):
    return ((n + m - 1) // m) * m


def _sublane(dtype):
    """Sublane packing of the second-to-last block dim (8 f32 / 16 bf16)."""
    return max(8, 32 // jnp.dtype(dtype).itemsize)


def _vmem_budget_bytes():
    """~3/4 of this generation's physical VMEM (48 MiB v7x, 96 MiB v5e/v6e)."""
    try:
        cap = int(pltpu.get_tpu_info().vmem_capacity_bytes)
    except Exception:   # hardware-info query unavailable -> conservative default
        cap = 64 << 20
    return (cap * 3) // 4


def _vmem_footprint(tile_m, d, h_pad, x_bytes, w_bytes):
    n_w_buf = 1 if _SINGLE_BUFFER_WEIGHTS else 2
    return (4 * tile_m * d * x_bytes                            # x + out double buffers
            + n_w_buf * (2 * d * h_pad + h_pad + d) * w_bytes   # weights + biases
            + tile_m * (h_pad + 2 * d) * 4)                     # f32 intermediates


def _choose_tile_m(m, d, h_pad, x_bytes, w_bytes, requested, budget, sublane):
    """Largest sublane-aligned row tile that fits VMEM; >=2 tiles when possible."""
    tile = max(sublane, min(_round_up(m, sublane), _round_up(requested, sublane)))
    while tile > sublane and _vmem_footprint(tile, d, h_pad, x_bytes, w_bytes) > budget:
        tile = max(sublane, _round_up(tile // 2, sublane))
    # TODO(synk): if the (padded) weights alone exceed the VMEM budget, add a
    # reduction grid axis over H / D with an f32 accumulator instead of
    # shrinking tile_m further.
    # Guarantee >= 2 row tiles so the "parallel" axis can be split across the
    # two v7x TensorCores (a 1-step grid idles one core).  On 1-TC chips the
    # extra step costs ~0.35 us, negligible.
    if m > sublane and pl.cdiv(m, tile) < 2:
        tile = max(sublane, _round_up(pl.cdiv(m, 2), sublane))
    return int(tile)


def _adapter_kernel(x_ref, w_up_ref, b_up_ref, w_dn_ref, b_dn_ref, o_ref):
    """One row tile: o = x + (ReLU(x @ W_up + b_up) @ W_dn + b_dn).

    x_ref:    (TM, D)   input rows
    w_up_ref: (D,  Hp)  up-projection weight (in, out), H zero-padded to Hp
    b_up_ref: (1,  Hp)  up-projection bias (zero-padded)
    w_dn_ref: (Hp, D)   down-projection weight (padded rows are zero)
    b_dn_ref: (1,  D)   down-projection bias
    o_ref:    (TM, D)   output rows (residual added), aliases x's HBM buffer
    """
    x = x_ref[...]
    h = jnp.dot(x, w_up_ref[...], preferred_element_type=jnp.float32)
    h = jnp.maximum(h + b_up_ref[...], 0.0)                      # (TM, Hp) f32
    y = jnp.dot(h.astype(w_dn_ref.dtype), w_dn_ref[...],
                preferred_element_type=jnp.float32)
    y = y + b_dn_ref[...]                                        # (TM, D) f32
    o_ref[...] = (x.astype(jnp.float32) + y).astype(o_ref.dtype)


@functools.partial(jax.jit, static_argnames=("tile_m", "vmem_limit"))
def _adapter_pallas(x2, w_up, b_up, w_dn, b_dn, *, tile_m, vmem_limit):
    m, d = x2.shape
    h = w_up.shape[1]
    h_pad = _round_up(h, _LANE)

    # Only the tiny weights / biases are zero-padded (along H) so the hidden
    # intermediate is lane-dense.  Zero padding keeps the math exact:
    # ReLU(x @ 0 + 0) = 0 feeds zero rows of W_dn.  x is never padded/copied.
    if h_pad != h:
        w_up = jnp.pad(w_up, ((0, 0), (0, h_pad - h)))
        w_dn = jnp.pad(w_dn, ((0, h_pad - h), (0, 0)))
        b_up = jnp.pad(b_up, (0, h_pad - h))
    b_up = b_up.reshape(1, h_pad)
    b_dn = b_dn.reshape(1, d)

    const_kw = (dict(pipeline_mode=pl.Buffered(1))
                if _SINGLE_BUFFER_WEIGHTS and hasattr(pl, "Buffered") else {})

    x_bytes = x2.dtype.itemsize
    w_bytes = w_up.dtype.itemsize
    cost = pl.CostEstimate(
        flops=4 * m * d * h + 2 * m * (h + d),
        transcendentals=0,
        bytes_accessed=(2 * m * d * x_bytes                      # read x + write out
                        + (2 * d * h + h + d) * w_bytes))        # weights + biases

    return pl.pallas_call(
        _adapter_kernel,
        out_shape=jax.ShapeDtypeStruct((m, d), x2.dtype),
        grid_spec=pltpu.PrefetchScalarGridSpec(
            num_scalar_prefetch=0,
            grid=(pl.cdiv(m, tile_m),),            # ragged last tile is masked
            in_specs=[
                pl.BlockSpec((tile_m, d), lambda i: (i, 0)),             # x rows
                pl.BlockSpec((d, h_pad), lambda i: (0, 0), **const_kw),  # W_up
                pl.BlockSpec((1, h_pad), lambda i: (0, 0), **const_kw),  # b_up
                pl.BlockSpec((h_pad, d), lambda i: (0, 0), **const_kw),  # W_dn
                pl.BlockSpec((1, d), lambda i: (0, 0), **const_kw),      # b_dn
            ],
            out_specs=pl.BlockSpec((tile_m, d), lambda i: (i, 0)),
        ),
        input_output_aliases={0: 0},               # residual written in place
        compiler_params=pltpu.CompilerParams(
            dimension_semantics=("parallel",),
            vmem_limit_bytes=vmem_limit),
        cost_estimate=cost,
    )(x2, w_up, b_up, w_dn, b_dn)


def adapter_forward(x, w_up, b_up, w_dn, b_dn, *, tile_m=512):
    """Bottleneck adapter: x + down_project(ReLU(up_project(x))); x is (..., D).

    For production on v5e/v6e/v7x pass bf16 x / weights: the kernel always
    accumulates in f32, and bf16 I/O halves HBM traffic on this bandwidth-bound op.
    """
    orig_shape = x.shape
    d = orig_shape[-1]
    h = w_up.shape[1]
    h_pad = _round_up(h, _LANE)
    x2 = x.reshape(-1, d)
    m = x2.shape[0]

    budget = _vmem_budget_bytes()
    sub = _sublane(x2.dtype)
    x_bytes = jnp.dtype(x2.dtype).itemsize
    w_bytes = jnp.dtype(w_up.dtype).itemsize
    tile = _choose_tile_m(m, d, h_pad, x_bytes, w_bytes, tile_m, budget, sub)
    needed = _vmem_footprint(tile, d, h_pad, x_bytes, w_bytes)
    vmem_limit = int(min(max(needed + (8 << 20), 32 << 20), budget))

    out = _adapter_pallas(x2, w_up, b_up, w_dn, b_dn,
                          tile_m=tile, vmem_limit=vmem_limit)
    return out.reshape(orig_shape)


def adapter_block_forward(x, block_fn, adapter_params, *, tile_m=512):
    """AdapterBlock.forward: x -> adapter(block(x)).

    # TODO(synk): `block` is an arbitrary injected submodule (a ViT block) with
    # no fixed op graph; it stays a user-supplied JAX callable — only the
    # adapter runs as a Pallas kernel.
    """
    x = block_fn(x)
    return adapter_forward(x, *adapter_params, tile_m=tile_m)


def init_adapter_params(key, input_dim, hidden_dim, dtype=jnp.float32):
    """Deterministic synthetic parameters (nn.Linear shapes, stored (in, out))."""
    k1, k2, k3, k4 = jax.random.split(key, 4)
    w_up = jax.random.normal(k1, (input_dim, hidden_dim), dtype) * 0.05
    b_up = jax.random.normal(k2, (hidden_dim,), dtype) * 0.05
    w_dn = jax.random.normal(k3, (hidden_dim, input_dim), dtype) * 0.05
    b_dn = jax.random.normal(k4, (input_dim,), dtype) * 0.05
    return w_up, b_up, w_dn, b_dn


def adapter_reference(x, w_up, b_up, w_dn, b_dn):
    """Pure-JAX reference mirroring the PyTorch adapter forward."""
    h = jnp.maximum(x @ w_up + b_up, 0.0)
    return x + (h @ w_dn + b_dn)


if __name__ == "__main__":
    batch, seq, input_dim, hidden_dim = 2, 8, 32, 16

    key = jax.random.PRNGKey(0)
    kx, kp = jax.random.split(key)
    x = jax.random.normal(kx, (batch, seq, input_dim), jnp.float32)
    w_up, b_up, w_dn, b_dn = init_adapter_params(kp, input_dim, hidden_dim)

    # Identity stand-in for the opaque wrapped `block` submodule.
    block_fn = lambda t: t

    # f32 run: strict check against the pure-JAX reference.
    out = adapter_block_forward(x, block_fn, (w_up, b_up, w_dn, b_dn))
    out = jax.block_until_ready(out)
    ref = adapter_reference(block_fn(x), w_up, b_up, w_dn, b_dn)
    assert out.shape == x.shape
    assert jnp.allclose(out, ref, atol=1e-5, rtol=1e-5), "f32 mismatch vs reference"

    # bf16 I/O run (recommended production path on v5e/v6e/v7x): halves HBM
    # traffic; accumulation inside the kernel stays f32.  Loose tolerance.
    x_bf = x.astype(jnp.bfloat16)
    params_bf = tuple(p.astype(jnp.bfloat16) for p in (w_up, b_up, w_dn, b_dn))
    out_bf = jax.block_until_ready(adapter_block_forward(x_bf, block_fn, params_bf))
    assert out_bf.shape == x.shape
    assert jnp.allclose(out_bf.astype(jnp.float32), ref, atol=5e-2, rtol=5e-2), \
        "bf16 mismatch vs reference"

    print("KERNEL_OK")
</pallas_src>

<mosaic_0001>
module attributes {stable_mosaic.version = 11 : i64} {
  func.func @_adapter_kernel(%arg0: i32, %arg1: memref<8x32xf32, #tpu.memory_space<vmem>>, %arg2: memref<32x128xf32, #tpu.memory_space<vmem>>, %arg3: memref<1x128xf32, #tpu.memory_space<vmem>>, %arg4: memref<128x32xf32, #tpu.memory_space<vmem>>, %arg5: memref<1x32xf32, #tpu.memory_space<vmem>>, %arg6: memref<8x32xf32, #tpu.memory_space<vmem>>) attributes {dimension_semantics = [#tpu.dimension_semantics<parallel>], iteration_bounds = array<i64: 2>, scalar_prefetch = 0 : i64, scratch_operands = 0 : i64, tpu.core_type = #tpu.core_type<tc>, window_params = [{transform_indices = @transform_0, window_bounds = array<i64: 8, 32>}, {pipeline_mode = #tpu.pipeline_mode<synchronous>, transform_indices = @transform_1, window_bounds = array<i64: 32, 128>}, {pipeline_mode = #tpu.pipeline_mode<synchronous>, transform_indices = @transform_2, window_bounds = array<i64: 1, 128>}, {pipeline_mode = #tpu.pipeline_mode<synchronous>, transform_indices = @transform_3, window_bounds = array<i64: 128, 32>}, {pipeline_mode = #tpu.pipeline_mode<synchronous>, transform_indices = @transform_4, window_bounds = array<i64: 1, 32>}, {transform_indices = @transform_5, window_bounds = array<i64: 8, 32>}]} {
    %c0 = arith.constant 0 : index
    %c0_0 = arith.constant 0 : index
    %0 = vector.load %arg1[%c0, %c0_0] : memref<8x32xf32, #tpu.memory_space<vmem>>, vector<8x32xf32>
    %c0_1 = arith.constant 0 : index
    %c0_2 = arith.constant 0 : index
    %1 = vector.load %arg2[%c0_1, %c0_2] : memref<32x128xf32, #tpu.memory_space<vmem>>, vector<32x128xf32>
    %cst = arith.constant dense<0.000000e+00> : vector<8x128xf32>
    %2 = tpu.matmul %0, %1, %cst {dimension_numbers = #tpu.dot_dimension_numbers<[1], [0], [0], [1], [0, 0, 1, 1], [], []>} : vector<8x32xf32>, vector<32x128xf32>, vector<8x128xf32> -> vector<8x128xf32>
    %c0_3 = arith.constant 0 : index
    %c0_4 = arith.constant 0 : index
    %3 = vector.load %arg3[%c0_3, %c0_4] : memref<1x128xf32, #tpu.memory_space<vmem>>, vector<1x128xf32>
    %4 = vector.broadcast %3 : vector<1x128xf32> to vector<8x128xf32>
    %5 = arith.addf %2, %4 : vector<8x128xf32>
    %cst_5 = arith.constant 0.000000e+00 : f32
    %6 = vector.broadcast %cst_5 : f32 to vector<8x128xf32>
    %7 = arith.maximumf %5, %6 : vector<8x128xf32>
    %c0_6 = arith.constant 0 : index
    %c0_7 = arith.constant 0 : index
    %8 = vector.load %arg4[%c0_6, %c0_7] : memref<128x32xf32, #tpu.memory_space<vmem>>, vector<128x32xf32>
    %cst_8 = arith.constant dense<0.000000e+00> : vector<8x32xf32>
    %9 = tpu.matmul %7, %8, %cst_8 {dimension_numbers = #tpu.dot_dimension_numbers<[1], [0], [0], [1], [0, 0, 1, 1], [], []>} : vector<8x128xf32>, vector<128x32xf32>, vector<8x32xf32> -> vector<8x32xf32>
    %c0_9 = arith.constant 0 : index
    %c0_10 = arith.constant 0 : index
    %10 = vector.load %arg5[%c0_9, %c0_10] : memref<1x32xf32, #tpu.memory_space<vmem>>, vector<1x32xf32>
    %11 = vector.broadcast %10 : vector<1x32xf32> to vector<8x32xf32>
    %12 = arith.addf %9, %11 : vector<8x32xf32>
    %13 = arith.addf %0, %12 : vector<8x32xf32>
    %c0_11 = arith.constant 0 : index
    %c0_12 = arith.constant 0 : index
    %14 = vector.load %arg6[%c0_11, %c0_12] : memref<8x32xf32, #tpu.memory_space<vmem>>, vector<8x32xf32>
    tpu.vector_store %arg6[%c0_11, %c0_12], %13 {strides = array<i32>} : memref<8x32xf32, #tpu.memory_space<vmem>>, vector<8x32xf32>,
    return
  }
  func.func @transform_0(%arg0: i32) -> (i32, i32) {
    %c0_i32 = arith.constant 0 : i32
    %c0_i32_0 = arith.constant 0 : i32
    return %arg0, %c0_i32 : i32, i32
  }
  func.func @transform_1(%arg0: i32) -> (i32, i32) {
    %c0_i32 = arith.constant 0 : i32
    %c0_i32_0 = arith.constant 0 : i32
    %c0_i32_1 = arith.constant 0 : i32
    return %c0_i32, %c0_i32_0 : i32, i32
  }
  func.func @transform_2(%arg0: i32) -> (i32, i32) {
    %c0_i32 = arith.constant 0 : i32
    %c0_i32_0 = arith.constant 0 : i32
    %c0_i32_1 = arith.constant 0 : i32
    return %c0_i32, %c0_i32_0 : i32, i32
  }
  func.func @transform_3(%arg0: i32) -> (i32, i32) {
    %c0_i32 = arith.constant 0 : i32
    %c0_i32_0 = arith.constant 0 : i32
    %c0_i32_1 = arith.constant 0 : i32
    return %c0_i32, %c0_i32_0 : i32, i32
  }
  func.func @transform_4(%arg0: i32) -> (i32, i32) {
    %c0_i32 = arith.constant 0 : i32
    %c0_i32_0 = arith.constant 0 : i32
    %c0_i32_1 = arith.constant 0 : i32
    return %c0_i32, %c0_i32_0 : i32, i32
  }
  func.func @transform_5(%arg0: i32) -> (i32, i32) {
    %c0_i32 = arith.constant 0 : i32
    %c0_i32_0 = arith.constant 0 : i32
    return %arg0, %c0_i32 : i32, i32
  }
}

</mosaic_0001>

<bundles_post_ra>
// kernel: _adapter_pallas.1
= control target key start
LH: loop header
LB: loop body
LE: loop exit
PB: predicated region body
PF: predicated region fallthrough
CT: control target
= control target key end

     0   :  { %10 = vsyncpa [#allocation3], 0  ;;  %s1034_s0 = inlined_call_operand.hbm [shape: f32[16,32], index: 0, kind: input, shape index: {}, may-alias: {0,5}]   ;;  %s1035_s1 = inlined_call_operand.vmem [shape: f32[32,128], index: 1, kind: input, shape index: {}]   ;;  %s1036_s2 = inlined_call_operand.vmem [shape: f32[1,128], index: 2, kind: input, shape index: {}]   ;;  %s1037_s3 = inlined_call_operand.vmem [shape: f32[128,32], index: 3, kind: input, shape index: {}]   ;;  %s1038_s4 = inlined_call_operand.vmem [shape: f32[1,32], index: 4, kind: input, shape index: {}]   ;;  %s1039_s5 = inlined_call_operand.hbm [shape: f32[16,32], index: 5, kind: output, shape index: {}, may-alias: {0,5}]  }
   0x1   :  { %12 = vsyncpa [#allocation3 + $0x1], 0 }
   0x2   :  { %13 = vsyncpa [#allocation4], 0 }
   0x3   :  { %15 = vsyncpa [#allocation4 + $0x1], 0  ;;  %s801_s18 = smov 0   ;;  %s803_s19 = smov 0  }
   0x4   :  { %s805_s20 = smov 0   ;;  %s807_s21 = smov 0  }
   0x5 LB: > { %s822_s22 = sadd.s32 4294967295, %s764_s21   ;;  %s506_s23 = sadd.s32 4294967294, %s764_s21   ;;  %s764_s21 = sphi %s807_s21, %s1054_s21   ;;  %s760_s20 = sphi %s805_s20, %s1053_s20   ;;  %s756_s19 = sphi %s803_s19, %s1052_s19   ;;  %s752_s18 = sphi %s801_s18, %s1051_s18  }
   0x6   : > { %s826_s24 = sadd.s32 1, %s764_s21   ;;  %s28_s25 = sadd.s32 1, %s760_s20 }
   0x7   : > { %s25_s26 = ssub.s32 %s764_s21, %s826_s24  ;;  %p35_p0 = scmp.ne.s32.totalorder %s760_s20, %s756_s19 }
   0x8   : > { %p26_p1 = scmp.eq.s32.totalorder %s25_s26, 0  ;;  %p36_p2 = scmp.eq.s32.totalorder %s764_s21, 0 }
   0x9   : > { %p41_p3 = scmp.ne.s32.totalorder %s756_s19, %s752_s18  ;;  %p42_p4 = scmp.eq.s32.totalorder %s822_s22, 0 }
   0xa   : > { %s838_s27 = scalar_select %p26_p1, %s760_s20, %s28_s25  }
   0xb   : > { %p840_p5 = por %p36_p2, %p35_p0  ;;  %p844_p6 = por %p42_p4, %p41_p3 }
   0xc   : > { %p149_p7 = scmp.eq.s32.totalorder %s822_s22, 1  ;;  %p155_p8 = scmp.eq.s32.totalorder %s506_s23, 1 }
   0xd   : > { %p631_p10 = scmp.lt.s32.totalorder %s764_s21, 2  ;;  %s187_s7 = sand.u32 1, %s760_s20  }
   0xe   : > { %p851_p11 = por %p149_p7, %p35_p0  ;;  %p855_p12 = por %p155_p8, %p41_p3 }
   0xf   : > { %s510_s8 = sshll.u32 %s764_s21, 7  ;;  %s509_s9 = sshll.u32 %s187_s7, 3 }
  0x10   : > { %s1043_s30 = scalar_select %p851_p11, 1, 0 }
  0x11   : > { %s1044_s6 = scalar_select %p855_p12, 1, 0 }
  0x12   : > { %s864_s12 = scalar_lea.hbm %s1034_s0, %s510_s8  ;;  %s191_s13 = scalar_lea.vmem [#allocation2], %s509_s9 }
  0x13   : > { %s198_s14 = sshll.u32 %s191_s13, 4  ;;  %p868_p13 = pnand %p631_p10, %p840_p5  ;;  %s872_s14 = int_to_ptr.vmem [resolvable:$true] %s198_s14 }
  0x14   : > { %s188_s16 = scalar_lea.sflag [#allocation3], %s187_s7  ;;  %s668_s17 = scalar_lea.hbm %s864_s12, 128 }
  0x15   : > { %p669_p2 = scmp.ne.s32.totalorder %s864_s12, %s668_s17  ;;  %p670_p3 = pneg %p868_p13 }
  0x16   : > { %s673_s26 = scalar_lea.hbm %s1034_s0, 256  ;;  %p674_p5 = scmp.lt.u32.totalorder %s864_s12, %s1034_s0 }
  0x17   : > { %p671_p4 = pnand %p670_p3, %p669_p2  ;;  %p675_p8 = scmp.lt.u32.totalorder %s673_s26, %s668_s17 }
  0x18   : > { %p677_p9 = scmp.lt.u32.totalorder %s668_s17, %s864_s12 }
  0x19   : > { %p672_p7 = pneg %p671_p4  ;;  %p676_p10 = por %p675_p8, %p674_p5 }
  0x1b   : > { %p678_p0 = por %p677_p9, %p676_p10 }
  0x1d   : > { %p679_p1 = pnand %p678_p0, %p672_p7 }
  0x1f   : > { %682 = shalt.err (!%p679_p1)
}
  0x20   : > { %s683_s7 = scalar_lea.vmem %s872_s14, 128  ;;  %s766_s9 = smov [#allocation2]  }
  0x21   : > { %p684_p2 = scmp.ne.s32.totalorder %s872_s14, %s683_s7  ;;  %s688_s10 = sshll.u32 %s766_s9, 4  ;;  %s689_s10 = int_to_ptr.vmem [resolvable:$false] %s688_s10 }
  0x22   : > { %s690_s11 = scalar_lea.vmem %s689_s10, 256  ;;  %p691_p11 = scmp.lt.s32.totalorder %s872_s14, %s689_s10 }
  0x23   : > { %p686_p4 = pnand %p684_p2, %p670_p3  ;;  %p692_p5 = scmp.lt.s32.totalorder %s690_s11, %s683_s7 }
  0x25   : > { %p687_p12 = pneg %p686_p4  ;;  %p693_p8 = por %p692_p5, %p691_p11 }
  0x27   : > { %p694_p9 = pnand %p693_p8, %p687_p12 }
  0x29   : > { %697 = shalt.err (!%p694_p9)
}
  0x2a   : > { %626 = dma.hbm_to_vmem [thread:$0]  (!%p868_p13), %s864_s12, 128, %s872_s14, %s188_s16  }
  0x2b   : > { %p1046_p0 = scmp.lt.s32.totalorder %s764_s21, 3  ;;  %p1047_p1 = scmp.ge.s32.totalorder %s764_s21, 1 }
  0x2d   : > { %p204_p3 = pnand %p1047_p1, %p1046_p0 }
  0x2e   : > { %s906_s13 = sand.u32 (!%p204_p3), 1, %s756_s19  }
  0x2f   : > { %207 = sbr.rel (%p204_p3) target bundleno = 511 (0x1ff), region = 40  ;;  %s512_s17 = sshll.u32 (!%p204_p3), %s906_s13, 3 }
  0x30   : > { %s210_s23 = scalar_lea.sflag (!%p204_p3), [#allocation3], %s906_s13  ;;  %s213_s15 = scalar_lea.vmem (!%p204_p3), [#allocation2], %s512_s17 }
  0x36   : > { %743 = dma.done.wait (%p844_p6), %s210_s23, 128  }
  0x37   : > { %745 = vsyncadd (%p844_p6), %s210_s23, 4294967168  ;;  %v767_v0 = vmov 0.0|0.0   ;;  %vm768_vm0 = vmmov 0   ;;  %v769_v1 = vmov 0.0   ;;  %v241_v2 = vld [vmem:[%s1035_s1] sm:$0xff]  ;;  %v242_v3 = vld [vmem:[%s1035_s1 + $0x8] sm:$0xff] }
  0x38   : > { %589 = vmatprep.subr.bf16.mxu0 %v767_v0  ;;  %551 = vmatprep.mubr.msk.f32.mxu0 %vm768_vm0, %v769_v1  ;;  %v243_v4 = vld [vmem:[%s1035_s1 + $0x10] sm:$0xff]  ;;  %v590_v5 = vpack.c.bf16 %v242_v3, %v241_v2  ;;  %v244_v6 = vld [vmem:[%s1035_s1 + $0x18] sm:$0xff]  ;;  %v327_v7 = vld [vmem:[%s1037_s3] sm:$0xff]  ;;  %vm252_vm1 = vcmask 261120   ;;  %s518_s25 = sshll.u32 %s822_s22, 7  ;;  %s239_s26 = scalar_lea.vmem [#allocation5], %s512_s17 }
  0x39   : > { %595 = vmatprep.subr.bf16.mxu1 %v767_v0  ;;  %586 = vmatprep.mubr.msk.f32.mxu1 %vm768_vm0, %v769_v1  ;;  %v328_v8 = vld [vmem:[%s1037_s3 + $0x8] sm:$0xff]  ;;  %v329_v9 = vld [vmem:[%s1037_s3 + $0x10] sm:$0xff]  ;;  %v330_v10 = vld [vmem:[%s1037_s3 + $0x18] sm:$0xff]  ;;  %v593_v11 = vpack.c.bf16 %v244_v6, %v243_v4  ;;  %s436_s28 = sshll.u32 %s239_s26, 4  ;;  %s989_s7 = scalar_lea.hbm %s1039_s5, %s518_s25  ;;  %s991_s28 = int_to_ptr.vmem [resolvable:$true] %s436_s28 }
  0x3a   : > { %591 = vmatpush3.bf16.msra.mxu0 %v590_v5  ;;  %v596_v12 = vpack.c.bf16 %v328_v8, %v327_v7  ;;  %v599_v13 = vpack.c.bf16 %v330_v10, %v329_v9  ;;  %v331_v14 = vld [vmem:[%s1037_s3 + $0x20] sm:$0xff]  ;;  %v332_v15 = vld [vmem:[%s1037_s3 + $0x28] sm:$0xff]  ;;  %v333_v18 = vld [vmem:[%s1037_s3 + $0x30] sm:$0xff]  ;;  %s423_s9 = scalar_lea.sflag [#allocation4], %s906_s13  ;;  %s698_s22 = scalar_lea.vmem %s991_s28, 128 }
  0x3b   : > { %592 = vmatprep.subr.bf16.mxu0 %v767_v0  ;;  %v240_v16 = vld [vmem:[%s213_s15] sm:$0xff]  ;;  %v602_v17 = vpack.c.bf16 %v332_v15, %v331_v14  ;;  %v334_v19 = vld [vmem:[%s1037_s3 + $0x38] sm:$0xff]  ;;  %v337_v24 = vld [vmem:[%s1037_s3 + $0x50] sm:$0xff]  ;;  %p699_p6 = scmp.ne.s32.totalorder %s991_s28, %s698_s22  ;;  %p1048_p11 = scmp.ne.s32.totalorder %s1043_s30, 0 }
  0x3c   : > { %597 = vmatpush3.bf16.msra.mxu1 %v596_v12  ;;  %v605_v20 = vpack.c.bf16 %v334_v19, %v333_v18  ;;  %v335_v21 = vld [vmem:[%s1037_s3 + $0x40] sm:$0xff]  ;;  %v336_v22 = vld [vmem:[%s1037_s3 + $0x48] sm:$0xff]  ;;  %v338_v25 = vld [vmem:[%s1037_s3 + $0x58] sm:$0xff]  ;;  %s770_s17 = smov [#allocation5]  }
  0x3d   : > { %598 = vmatprep.subr.bf16.mxu1 %v767_v0  ;;  %v608_v23 = vpack.c.bf16 %v336_v22, %v335_v21  ;;  %v611_v26 = vpack.c.bf16 %v338_v25, %v337_v24  ;;  %v339_v27 = vld [vmem:[%s1037_s3 + $0x60] sm:$0xff]  ;;  %v340_v28 = vld [vmem:[%s1037_s3 + $0x68] sm:$0xff]  ;;  %v341_v30 = vld [vmem:[%s1037_s3 + $0x70] sm:$0xff]  ;;  %p700_p12 = pnand %p699_p6, %p1048_p11  ;;  %s702_s10 = sshll.u32 %s770_s17, 4  ;;  %s703_s10 = int_to_ptr.vmem [resolvable:$false] %s702_s10 }
  0x3e   : > { %594 = vmatpush3.bf16.msra.mxu0 %v593_v11  ;;  %v614_v29 = vpack.c.bf16 %v340_v28, %v339_v27  ;;  %v342_v31 = vld [vmem:[%s1037_s3 + $0x78] sm:$0xff]  ;;  %v514_v33 = vld [vmem:[%s1036_s2] ss:$0 sm:$0xff]  ;;  %s704_s11 = scalar_lea.vmem %s703_s10, 256  ;;  %p705_p7 = scmp.lt.s32.totalorder %s991_s28, %s703_s10 }
  0x3f   : > { %v617_v32 = vpack.c.bf16 %v342_v31, %v341_v30  ;;  %v516_v38 = vld [vmem:[%s1038_s4] ss:$0 sm:$0xff]  ;;  %p701_p13 = pneg %p700_p12  ;;  %p706_p10 = scmp.lt.s32.totalorder %s704_s11, %s698_s22 }
  0x40   : > { %600 = vmatpush3.bf16.msra.mxu1 %v599_v13 }
  0x41   : > { %552 = vmatmul.mubr.msk.f32.vlgmr.msra.gmra.mrb[0].mxu0 %vm252_vm1, %v240_v16  ;;  %601 = vmatprep.subr.bf16.mxu1 %v767_v0  ;;  %p707_p2 = por %p706_p10, %p705_p7 }
  0x43   : > { %p708_p4 = pnand %p707_p2, %p701_p13 }
  0x44   : > { %603 = vmatpush3.bf16.msra.mxu1 %v602_v17 }
  0x45   : > { %604 = vmatprep.subr.bf16.mxu1 %v767_v0 }
  0x48   : > { %606 = vmatpush3.bf16.msra.mxu1 %v605_v20 }
  0x49   : > { %607 = vmatprep.subr.bf16.mxu1 %v767_v0 }
  0x4c   : > { %609 = vmatpush3.bf16.msra.mxu1 %v608_v23 }
  0x4d   : > { %610 = vmatprep.subr.bf16.mxu1 %v767_v0 }
  0x50   : > { %612 = vmatpush3.bf16.msra.mxu1 %v611_v26 }
  0x51   : > { %613 = vmatprep.subr.bf16.mxu1 %v767_v0 }
  0x54   : > { %615 = vmatpush3.bf16.msra.mxu1 %v614_v29 }
  0x55   : > { %616 = vmatprep.subr.bf16.mxu1 %v767_v0 }
  0x58   : > { %618 = vmatpush3.bf16.msra.mxu1 %v617_v32 }
 0x114   : > { %v322_v34 = vpop.f32.mrb[0].mxu0 }
 0x115   : > { %v323_v35 = vadd.f32 %v514_v33, %v322_v34  ;;  %v553_v36 = vpop.f32.mrb[1].mxu0 }
 0x117   : > { %v326_v37 = vmax.f32 %v323_v35, 0.0 }
 0x119   : > { %587 = vmatmul.mubr.f32.vlgmr.msra.gmra.mrb[0].mxu1 %v326_v37 }
 0x1ec   : > { %v416_v39 = vpop.f32.mrb[0].mxu1 }
 0x1ed   : > { %v417_v40 = vadd.f32 %v516_v38, %v416_v39  ;;  %v588_v41 = vpop.f32.mrb[1].mxu1 }
 0x1ef   : > { %v420_v42 = vadd.f32 %v417_v40, %v240_v16 }
 0x1f1   : > { %421 = vst.msk [vmem:[%s239_s26] sm:$0xff] %vm252_vm1, %v420_v42 }
 0x1f2   : > { %711 = shalt.err (!%p708_p4)
}
 0x1f3   : > { %s712_s13 = scalar_lea.hbm %s989_s7, 128  ;;  %s716_s12 = scalar_lea.hbm %s1039_s5, 256 }
 0x1f4   : > { %p713_p5 = scmp.ne.s32.totalorder %s989_s7, %s712_s13  ;;  %p717_p0 = scmp.lt.u32.totalorder %s989_s7, %s1039_s5 }
 0x1f5   : > { %p718_p1 = scmp.lt.u32.totalorder %s716_s12, %s712_s13  ;;  %p720_p6 = scmp.lt.u32.totalorder %s712_s13, %s989_s7 }
 0x1f6   : > { %p714_p8 = pnand %p713_p5, %p1048_p11 }
 0x1f7   : > { %p719_p3 = por %p718_p1, %p717_p0 }
 0x1f8   : > { %p715_p9 = pneg %p714_p8 }
 0x1f9   : > { %p721_p12 = por %p720_p6, %p719_p3 }
 0x1fb   : > { %p722_p13 = pnand %p721_p12, %p715_p9 }
 0x1fd   : > { %725 = shalt.err (!%p722_p13)
}
 0x1fe   : > { %621 = dma.vmem_to_hbm [thread:$0]  (%p1048_p11), %s991_s28, 128, %s989_s7, %s423_s9  }
 0x1ff PF: > { %s448_s25 = sand.u32 1, %s752_s18   ;;  %p1049_p7 = scmp.ne.s32.totalorder %s1044_s6, 0 }
 0x200   : > { %p1050_p10 = scmp.ge.s32.totalorder %s764_s21, 2  ;;  %s449_s26 = scalar_lea.sflag [#allocation4], %s448_s25 }
 0x202   : > { %p628_p2 = pnand %p1050_p10, %p1049_p7 }
 0x204   : > { %747 = dma.done.wait (!%p628_p2), %s449_s26, 128  }
 0x205   : > { %749 = vsyncadd (!%p628_p2), %s449_s26, 4294967168  ;;  %p18_p4 = scmp.ge.s32.totalorder %s826_s24, 4   ;;  %s1051_s18 = smov %s756_s19 }
 0x206   : > { %s1052_s19 = smov %s760_s20  ;;  %s1053_s20 = smov %s838_s27 }
 0x207   : > { %s1054_s21 = smov %s826_s24  ;;  %20 = sbr.rel (!%p18_p4) target bundleno = 5 (0x5), region = 85 }
 0x20e   :  { %454 = vsyncpa [#allocation3], 1 }
 0x20f   :  { %456 = vsyncpa [#allocation3 + $0x1], 1 }
 0x210   :  { %457 = vsyncpa [#allocation4], 1 }
 0x211   :  { %459 = vsyncpa [#allocation4 + $0x1], 1 }

</bundles_post_ra>
